<compile_context>
chip_gen: v6e
topology: v6e:2x2x1
jax: 0.10.0
libtpu: 0.0.40
codegen_flags: <defaults>
</compile_context>

<pallas_src>
import functools
import math

import jax
import jax.numpy as jnp
from jax.experimental import pallas as pl
from jax.experimental.pallas import tpu as pltpu


def _round_up(x, m):
    return (x + m - 1) // m * m


def _rotary_table_kernel(pos_ref, w_ref, out_ref, *, pack):
    # pos_ref : (TILE_M, pack)   f32  -- `pack` consecutive positions per packed row
    # w_ref   : (pack, L)        f32  -- block-diagonal inverse-frequency expansion
    # out_ref : (2, TILE_M, L)   f32  -- out[0] = cos table, out[1] = sin table
    pos = pos_ref[...]
    w = w_ref[...]
    # idx[m, l] = pos[m, l // emb_dim] * theta_full[l % emb_dim]
    # All cross terms of the sum are exactly 0.0 (block-diagonal W), so this is
    # bit-exact f32 VPU math; pack is a small static int (<= 128), loop unrolls.
    idx = pos[:, 0:1] * w[0:1, :]
    for j in range(1, pack):
        idx = idx + pos[:, j : j + 1] * w[j : j + 1, :]
    out_ref[0] = jnp.cos(idx)
    out_ref[1] = jnp.sin(idx)


@functools.partial(
    jax.jit,
    static_argnames=("rotary_dim", "rope_theta", "model_type", "tile_rows"),
)
def rotary_forward(position_ids, *, rotary_dim, rope_theta, model_type="llama",
                   tile_rows=2048):
    """Pallas implementation of Rotary.forward (all model types)."""
    # Parameter-free module: inverse frequencies are derived deterministically.
    # These constant-fold under jit (static rope_theta / rotary_dim).
    theta = 1.0 / (
        rope_theta
        ** (jnp.arange(0, rotary_dim, 2, dtype=jnp.float32) / rotary_dim)
    )  # (half,)
    if model_type != "chatglm2":
        theta_full = jnp.concatenate([theta, theta])  # cat((emb, emb), -1) pre-folded
    else:
        theta_full = theta
    emb_dim = int(theta_full.shape[0])

    # NOTE: int -> f32 position cast (as in the PyTorch module) is exact only up
    # to 2^24; this matches the reference semantics.
    pos = position_ids.astype(jnp.float32).reshape(-1)
    n = int(pos.shape[0])

    # Lane packing: put `pack` consecutive positions into one lane-dense output
    # row whose width is a multiple of 128 (unmasked full-width stores).
    pack = math.lcm(emb_dim, 128) // emb_dim
    lane_width = pack * emb_dim

    # Block-diagonal expansion: W[j, j*emb_dim:(j+1)*emb_dim] = theta_full.
    w = jnp.kron(jnp.eye(pack, dtype=jnp.float32), theta_full[None, :])  # (pack, L)

    # --- Tile / grid sizing ---------------------------------------------------
    m = -(-n // pack)  # packed rows actually needed (output rows)
    # Aim for >= 4 grid steps: shards across v7x's 2 TensorCores and overlaps
    # output writeback with the next tile's compute. Cap the output block at
    # ~4 MiB (x2 double-buffering) so it fits the scoped VMEM limit everywhere.
    bytes_per_row = 2 * lane_width * 4
    max_tile_by_vmem = max(8, ((4 << 20) // bytes_per_row) // 8 * 8)
    tile_rows_al = max(8, (int(tile_rows) // 8) * 8)
    tile_m = min(_round_up(-(-m // 4), 8), tile_rows_al, max_tile_by_vmem)
    if tile_m >= m:
        tile_m = m  # single full block; no sublane-alignment requirement
    grid_m = -(-m // tile_m)

    # Pad the (tiny) position input so every *input* block is fully in-bounds;
    # the *output* array is exactly (2, m, L) and the last grid step's write is
    # clipped by Pallas, so no padded output -> no post-kernel slice copy when
    # n % pack == 0 (the common case).
    rows_pad = grid_m * tile_m
    pad_amt = rows_pad * pack - n
    if pad_amt:
        pos = jnp.pad(pos, (0, pad_amt))
    pos_rows = pos.reshape(rows_pad, pack)

    out = pl.pallas_call(
        functools.partial(_rotary_table_kernel, pack=pack),
        out_shape=jax.ShapeDtypeStruct((2, m, lane_width), jnp.float32),
        grid=(grid_m,),
        in_specs=[
            pl.BlockSpec((tile_m, pack), lambda i: (i, 0)),
            pl.BlockSpec((pack, lane_width), lambda i: (0, 0)),
        ],
        out_specs=pl.BlockSpec((2, tile_m, lane_width), lambda i: (0, i, 0)),
        compiler_params=pltpu.CompilerParams(
            dimension_semantics=("parallel",)
        ),
        cost_estimate=pl.CostEstimate(
            flops=4 * m * lane_width * pack,      # idx build (mul + add per pack col)
            transcendentals=2 * m * lane_width,   # one cos + one sin per output element
            bytes_accessed=(2 * m * lane_width + rows_pad * pack
                            + pack * lane_width) * 4,
        ),
    )(pos_rows, w)

    # (2, m, pack*emb_dim) is a row-major view of (2, m*pack, emb_dim).
    n_full = m * pack
    emb = out.reshape(2, n_full, emb_dim)
    if n_full != n:
        # TODO(synk): only hit when N is not a multiple of pack; this slice is a
        # full-table copy. Consumers that can tolerate a padded table should
        # slice lazily instead.
        emb = emb[:, :n, :]
    # unsqueeze(2).unsqueeze(1): (2, N, emb_dim) -> (2, 1, N, 1, emb_dim)
    return emb.reshape(2, 1, n, 1, emb_dim)


def _reference(position_ids, *, rotary_dim, rope_theta, model_type="llama"):
    theta = 1.0 / (
        rope_theta
        ** (jnp.arange(0, rotary_dim, 2, dtype=jnp.float32) / rotary_dim)
    )
    pos = position_ids.astype(jnp.float32).reshape(-1, 1)
    idx = pos * theta
    emb = jnp.stack([jnp.cos(idx), jnp.sin(idx)])
    if model_type != "chatglm2":
        emb = jnp.concatenate([emb, emb], axis=-1)
    return emb[:, None, :, None, :]


if __name__ == "__main__":
    key = jax.random.PRNGKey(0)
    batch, seq = 2, 8
    position_ids = jax.random.randint(key, (batch, seq), 0, 128, dtype=jnp.int32)

    configs = [
        # head_dim (= rotary_dim) = 32: lane-packed path, pack = 4.
        dict(rotary_dim=32, rope_theta=10000.0, model_type="llama"),
        # rotary_dim = 128: already lane-dense, pack = 1.
        dict(rotary_dim=128, rope_theta=10000.0, model_type="llama"),
        # chatglm2: half-width (non-duplicated) table, emb_dim = 32, pack = 4.
        dict(rotary_dim=64, rope_theta=10000.0, model_type="chatglm2"),
    ]
    for cfg in configs:
        out = jax.block_until_ready(rotary_forward(position_ids, **cfg))
        ref = _reference(position_ids, **cfg)
        assert out.shape == ref.shape, (out.shape, ref.shape, cfg)
        assert jnp.allclose(out, ref, atol=1e-5, rtol=1e-5), cfg

    # Longer sequence: exercises the multi-step parallel grid and the clipped
    # (partial) last output block, with no post-kernel slice copy.
    long_pos = jnp.arange(1040, dtype=jnp.int32).reshape(1, -1)
    out_l = jax.block_until_ready(
        rotary_forward(long_pos, rotary_dim=32, rope_theta=10000.0)
    )
    ref_l = _reference(long_pos, rotary_dim=32, rope_theta=10000.0)
    assert out_l.shape == ref_l.shape, (out_l.shape, ref_l.shape)
    assert jnp.allclose(out_l, ref_l, atol=1e-5, rtol=1e-5)

    print("KERNEL_OK")
</pallas_src>

<mosaic_0001>
module attributes {stable_mosaic.version = 11 : i64} {
  func.func @_rotary_table_kernel(%arg0: i32, %arg1: memref<4x4xf32, #tpu.memory_space<vmem>>, %arg2: memref<4x128xf32, #tpu.memory_space<vmem>>, %arg3: memref<2x4x128xf32, #tpu.memory_space<vmem>>) attributes {dimension_semantics = [#tpu.dimension_semantics<parallel>], iteration_bounds = array<i64: 1>, scalar_prefetch = 0 : i64, scratch_operands = 0 : i64, tpu.core_type = #tpu.core_type<tc>, window_params = [{transform_indices = @transform_0, window_bounds = array<i64: 4, 4>}, {pipeline_mode = #tpu.pipeline_mode<synchronous>, transform_indices = @transform_1, window_bounds = array<i64: 4, 128>}, {transform_indices = @transform_2, window_bounds = array<i64: 2, 4, 128>}]} {
    %c0 = arith.constant 0 : index
    %c0_0 = arith.constant 0 : index
    %0 = vector.load %arg1[%c0, %c0_0] : memref<4x4xf32, #tpu.memory_space<vmem>>, vector<4x4xf32>
    %c0_1 = arith.constant 0 : index
    %c0_2 = arith.constant 0 : index
    %1 = vector.load %arg2[%c0_1, %c0_2] : memref<4x128xf32, #tpu.memory_space<vmem>>, vector<4x128xf32>
    %2 = vector.extract_strided_slice %0 {offsets = [0, 0], sizes = [4, 1], strides = [1, 1]} : vector<4x4xf32> to vector<4x1xf32>
    %3 = vector.extract_strided_slice %1 {offsets = [0, 0], sizes = [1, 128], strides = [1, 1]} : vector<4x128xf32> to vector<1x128xf32>
    %4 = vector.broadcast %2 : vector<4x1xf32> to vector<4x128xf32>
    %5 = vector.broadcast %3 : vector<1x128xf32> to vector<4x128xf32>
    %6 = arith.mulf %4, %5 : vector<4x128xf32>
    %7 = vector.extract_strided_slice %0 {offsets = [0, 1], sizes = [4, 1], strides = [1, 1]} : vector<4x4xf32> to vector<4x1xf32>
    %8 = vector.extract_strided_slice %1 {offsets = [1, 0], sizes = [1, 128], strides = [1, 1]} : vector<4x128xf32> to vector<1x128xf32>
    %9 = vector.broadcast %7 : vector<4x1xf32> to vector<4x128xf32>
    %10 = vector.broadcast %8 : vector<1x128xf32> to vector<4x128xf32>
    %11 = arith.mulf %9, %10 : vector<4x128xf32>
    %12 = arith.addf %6, %11 : vector<4x128xf32>
    %13 = vector.extract_strided_slice %0 {offsets = [0, 2], sizes = [4, 1], strides = [1, 1]} : vector<4x4xf32> to vector<4x1xf32>
    %14 = vector.extract_strided_slice %1 {offsets = [2, 0], sizes = [1, 128], strides = [1, 1]} : vector<4x128xf32> to vector<1x128xf32>
    %15 = vector.broadcast %13 : vector<4x1xf32> to vector<4x128xf32>
    %16 = vector.broadcast %14 : vector<1x128xf32> to vector<4x128xf32>
    %17 = arith.mulf %15, %16 : vector<4x128xf32>
    %18 = arith.addf %12, %17 : vector<4x128xf32>
    %19 = vector.extract_strided_slice %0 {offsets = [0, 3], sizes = [4, 1], strides = [1, 1]} : vector<4x4xf32> to vector<4x1xf32>
    %20 = vector.extract_strided_slice %1 {offsets = [3, 0], sizes = [1, 128], strides = [1, 1]} : vector<4x128xf32> to vector<1x128xf32>
    %21 = vector.broadcast %19 : vector<4x1xf32> to vector<4x128xf32>
    %22 = vector.broadcast %20 : vector<1x128xf32> to vector<4x128xf32>
    %23 = arith.mulf %21, %22 : vector<4x128xf32>
    %24 = arith.addf %18, %23 : vector<4x128xf32>
    %25 = math.cos %24 : vector<4x128xf32>
    %c0_3 = arith.constant 0 : index
    %c0_4 = arith.constant 0 : index
    %c0_5 = arith.constant 0 : index
    %26 = vector.load %arg3[%c0_3, %c0_4, %c0_5] : memref<2x4x128xf32, #tpu.memory_space<vmem>>, vector<1x4x128xf32>
    %27 = vector.shape_cast %26 : vector<1x4x128xf32> to vector<4x128xf32>
    %28 = vector.shape_cast %25 : vector<4x128xf32> to vector<1x4x128xf32>
    tpu.vector_store %arg3[%c0_3, %c0_4, %c0_5], %28 {strides = array<i32>} : memref<2x4x128xf32, #tpu.memory_space<vmem>>, vector<1x4x128xf32>,
    %29 = math.sin %24 : vector<4x128xf32>
    %c1 = arith.constant 1 : index
    %c0_6 = arith.constant 0 : index
    %c0_7 = arith.constant 0 : index
    %30 = vector.load %arg3[%c1, %c0_6, %c0_7] : memref<2x4x128xf32, #tpu.memory_space<vmem>>, vector<1x4x128xf32>
    %31 = vector.shape_cast %30 : vector<1x4x128xf32> to vector<4x128xf32>
    %32 = vector.shape_cast %29 : vector<4x128xf32> to vector<1x4x128xf32>
    tpu.vector_store %arg3[%c1, %c0_6, %c0_7], %32 {strides = array<i32>} : memref<2x4x128xf32, #tpu.memory_space<vmem>>, vector<1x4x128xf32>,
    return
  }
  func.func @transform_0(%arg0: i32) -> (i32, i32) {
    %c0_i32 = arith.constant 0 : i32
    %c0_i32_0 = arith.constant 0 : i32
    return %arg0, %c0_i32 : i32, i32
  }
  func.func @transform_1(%arg0: i32) -> (i32, i32) {
    %c0_i32 = arith.constant 0 : i32
    %c0_i32_0 = arith.constant 0 : i32
    %c0_i32_1 = arith.constant 0 : i32
    return %c0_i32, %c0_i32_0 : i32, i32
  }
  func.func @transform_2(%arg0: i32) -> (i32, i32, i32) {
    %c0_i32 = arith.constant 0 : i32
    %c0_i32_0 = arith.constant 0 : i32
    %c0_i32_1 = arith.constant 0 : i32
    return %c0_i32, %arg0, %c0_i32_0 : i32, i32, i32
  }
}

</mosaic_0001>

<bundles_post_ra>
// kernel: rotary_forward.1
= control target key start
LH: loop header
LB: loop body
LE: loop exit
PB: predicated region body
PF: predicated region fallthrough
CT: control target
= control target key end

     0   :  { %v299_v0 = vmov 0   ;;  %v300_v2 = vmov 2   ;;  %v301_v3 = vmov 1   ;;  %v302_v4 = vmov 3   ;;  %s357_s0 = inlined_call_operand.vmem [shape: f32[4,4], index: 0, kind: input, shape index: {}]   ;;  %s358_s1 = inlined_call_operand.vmem [shape: f32[4,128], index: 1, kind: input, shape index: {}]   ;;  %s359_s2 = inlined_call_operand.vmem [shape: f32[2,4,128], index: 2, kind: output, shape index: {}]  }
   0x1   :  { %290 = vset.pattern.permute.xlu0 %v299_v0  ;;  %v11_v1 = vld [vmem:[%s357_s0] sm:$0xf]  ;;  %292 = vset.pattern.permute.xlu1 %v300_v2  ;;  %v18_v5 = vlaneseq  ;;  %v303_v37 = vmov 683565275   ;;  %v304_v39 = vmov 2475754826  }
   0x2   :  { %15 = vperm.xlu0 %290, %v11_v1   ;;  %34 = vperm.xlu1 %292, %v11_v1   ;;  %v12_v9 = vld [vmem:[%s358_s1] sm:$0xf]  ;;  %v305_v42 = vmov 2131351028   ;;  %v306_v45 = vmov 2102212464  }
   0x3   :  { %v19_v6 = vshrl.u32 %v18_v5, 7  ;;  %v307_v48 = vmov 920167782   ;;  %v308_v51 = vmov 1326507024  }
   0x5   :  { %v20_v7 = vsub.s32 0, %v19_v6  ;;  %v29_v8 = vsub.s32 1, %v19_v6  ;;  %v39_v11 = vsub.s32 2, %v19_v6  ;;  %v49_v13 = vsub.s32 3, %v19_v6 }
   0x6   :  { %291 = vset.pattern.permute.xlu0 %v301_v3  ;;  %293 = vset.pattern.permute.xlu1 %v302_v4 }
   0x7   :  { %24 = vperm.xlu0 %291, %v11_v1   ;;  %44 = vperm.xlu1 %293, %v11_v1   ;;  %v21_v14 = vrot.slane %v12_v9, %v20_v7  ;;  %v30_v15 = vrot.slane %v12_v9, %v29_v8  ;;  %v40_v16 = vrot.slane %v12_v9, %v39_v11 }
   0x8   :  { %v50_v17 = vrot.slane %v12_v9, %v49_v13 }
   0xb   :  { %294 = vset.pattern.permute.xlu0 %v302_v4 }
  0x7d   :  { %v16_v10 = vpop.permute.xlu0 %15  ;;  %v35_v12 = vpop.permute.xlu1 %34 }
  0x7e   :  { %v22_v20 = vmul.f32 %v21_v14, %v16_v10  ;;  %v41_v22 = vmul.f32 %v40_v16, %v35_v12 }
  0x82   :  { %v25_v18 = vpop.permute.xlu0 %24  ;;  %v45_v19 = vpop.permute.xlu1 %44 }
  0x83   :  { %v31_v21 = vmul.f32 %v30_v15, %v25_v18  ;;  %v51_v24 = vmul.f32 %v50_v17, %v45_v19 }
  0x85   :  { %v32_v23 = vadd.f32 %v31_v21, %v22_v20 }
  0x87   :  { %v42_v25 = vadd.f32 %v41_v22, %v32_v23 }
  0x89   :  { %v330_v26 = vadd.f32 %v51_v24, %v42_v25 }
  0x8b   :  { %v56_v27 = vand.u32 2139095040, %v330_v26  ;;  %v53_v31 = vand.u32 2147483647, %v330_v26  ;;  %vm55_vm7 = vcmp.lt.s32.totalorder %v330_v26, 0  ;;  %vm145_vm15 = vweird.f32 %v330_v26 }
  0x8d   :  { %v57_v28 = vshrl.u32 %v56_v27, 23  ;;  %v60_v34 = vand.u32 8388607, %v53_v31  ;;  %vm54_vm8 = vcmp.le.f32.partialorder %v53_v31, 0.7853982 }
  0x8f   :  { %v267_v29 = vadd.s32 4294967169, %v57_v28  ;;  %v61_v53 = vor.u32 8388608, %v60_v34 }
  0x91   :  { %v63_v30 = vadd.s32 1, %v267_v29  ;;  %v101_v3 = vshll.u32 %v61_v53, 8 }
  0x93   :  { %vm64_vm0 = vcmp.gt.s32.totalorder %v63_v30, 0 }
  0x94   :  { %v65_v32 = vsel %vm64_vm0, %v63_v30, 0 }
  0x95   :  { %v67_v33 = vand.u32 31, %v65_v32  ;;  %v66_v36 = vshrl.u32 %v65_v32, 5 }
  0x97   :  { %v68_v35 = vsub.s32 32, %v67_v33  ;;  %v70_v38 = vshll.u32 %v303_v37, %v67_v33  ;;  %v73_v40 = vshll.u32 %v304_v39, %v67_v33  ;;  %v76_v44 = vshll.u32 %v305_v42, %v67_v33 }
  0x98   :  { %v79_v47 = vshll.u32 %v306_v45, %v67_v33  ;;  %v82_v50 = vshll.u32 %v307_v48, %v67_v33  ;;  %vm85_vm1 = vcmp.lt.s32.totalorder %v66_v36, 1  ;;  %vm88_vm2 = vcmp.lt.s32.totalorder %v66_v36, 4 }
  0x99   :  { %v71_v41 = vshrl.u32 %v304_v39, %v68_v35  ;;  %v74_v43 = vshrl.u32 %v305_v42, %v68_v35  ;;  %v77_v46 = vshrl.u32 %v306_v45, %v68_v35  ;;  %v80_v49 = vshrl.u32 %v307_v48, %v68_v35 }
  0x9a   :  { %v83_v52 = vshrl.u32 %v308_v51, %v68_v35  ;;  %v69_v62 = vshrl.u32 %v303_v37, %v68_v35  ;;  %vm87_vm3 = vcmp.lt.s32.totalorder %v66_v36, 3  ;;  %vm86_vm4 = vcmp.lt.s32.totalorder %v66_v36, 2 }
  0x9b   :  { %v72_v54 = vor.u32 %v71_v41, %v70_v38  ;;  %v75_v55 = vor.u32 %v74_v43, %v73_v40  ;;  %v78_v56 = vor.u32 %v77_v46, %v76_v44  ;;  %v81_v57 = vor.u32 %v80_v49, %v79_v47 }
  0x9c   :  { %v84_v58 = vor.u32 %v83_v52, %v82_v50 }
  0x9d   :  { %v90_v59 = vsel %vm88_vm2, %v78_v56, 2102212464  ;;  %v93_v60 = vsel %vm85_vm1, %v72_v54, %v75_v55  ;;  %v97_v61 = vsel %vm85_vm1, %v75_v55, %v78_v56  ;;  %v94_v63 = vsel %vm88_vm2, %v81_v57, 920167782 }
  0x9e   :  { %v98_v0 = vsel %vm88_vm2, %v84_v58, 1326507024  ;;  %v95_v1 = vsel %vm87_vm3, %v78_v56, %v94_v63  ;;  %v89_v4 = vsel %vm85_vm1, %v69_v62, %v72_v54  ;;  %v91_v5 = vsel %vm87_vm3, %v75_v55, %v90_v59 }
  0x9f   :  { %v99_v2 = vsel %vm87_vm3, %v81_v57, %v98_v0  ;;  %v96_v6 = vsel %vm86_vm4, %v93_v60, %v95_v1  ;;  %v92_v12 = vsel %vm86_vm4, %v89_v4, %v91_v5 }
  0xa0   :  { %v100_v7 = vsel %vm86_vm4, %v97_v61, %v99_v2  ;;  %v339_v10 = vmul.u32.u64.low %v101_v3, %v96_v6  ;;  %v340_v11 = vmul.u32.u64.high %v101_v3, %v96_v6, %v339_v10  ;;  %v108_v14 = vmul.u32 %v101_v3, %v92_v12 }
  0xa1   :  { %v336_v8 = vmul.u32.u64.low %v101_v3, %v100_v7  ;;  %v337_v9 = vmul.u32.u64.high %v101_v3, %v100_v7, %v336_v8 }
  0xa2   :  { %v111_v13 = vadd.s32 1, %v340_v11 }
  0xa3   :  { %vm110_vm5 = vc.u32 %v337_v9, %v339_v10  ;;  %v109_v27 = vadd.s32 %v339_v10, %v337_v9 }
  0xa4   :  { %v112_v15 = vsel %vm110_vm5, %v111_v13, %v340_v11 }
  0xa5   :  { %v113_v16 = vadd.s32 %v112_v15, %v108_v14 }
  0xa7   :  { %v114_v17 = vadd.s32 536870912, %v113_v16 }
  0xa9   :  { %v115_v18 = vshrl.u32 %v114_v17, 30 }
  0xab   :  { %v116_v19 = vshll.u32 %v115_v18, 30  ;;  %v139_v41 = vsub.s32 4, %v115_v18 }
  0xad   :  { %v117_v20 = vsub.s32 %v113_v16, %v116_v19  ;;  %v140_v44 = vsel %vm55_vm7, %v139_v41, %v115_v18 }
  0xae   :  { %v142_v45 = vsel %vm54_vm8, 0, %v140_v44 }
  0xaf   :  { %v119_v21 = vsub.s32 0, %v117_v20  ;;  %v250_v46 = vadd.s32 3, %v142_v45  ;;  %v146_v47 = vand.u32 3, %v142_v45 }
  0xb1   :  { %v268_v22 = vmin.u32 %v119_v21, %v117_v20  ;;  %v251_v48 = vand.u32 3, %v250_v46  ;;  %vm151_vm9 = vcmp.eq.s32.totalorder %v146_v47, 2  ;;  %vm148_vm11 = vcmp.eq.s32.totalorder %v146_v47, 0 }
  0xb2   :  { %vm147_vm13 = vcmp.lt.s32.totalorder %v146_v47, 2 }
  0xb3   :  { %v121_v23 = vclz %v268_v22  ;;  %vm256_vm10 = vcmp.eq.s32.totalorder %v251_v48, 2  ;;  %vm253_vm12 = vcmp.eq.s32.totalorder %v251_v48, 0  ;;  %vm252_vm14 = vcmp.lt.s32.totalorder %v251_v48, 2 }
  0xb5   :  { %v269_v24 = vadd.s32 4294967294, %v121_v23 }
  0xb7   :  { %vm270_vm6 = vcmp.lt.s32.totalorder %v269_v24, 0 }
  0xb8   :  { %v124_v25 = vsel %vm270_vm6, 0, %v269_v24 }
  0xb9   :  { %v125_v28 = vsub.s32 32, %v124_v25  ;;  %v129_v29 = vsub.s32 4294967266, %v124_v25  ;;  %v126_v30 = vshll.u32 %v117_v20, %v124_v25 }
  0xbb   :  { %v127_v32 = vshrl.u32 %v109_v27, %v125_v28  ;;  %v130_v33 = vadd.s32 127, %v129_v29 }
  0xbd   :  { %v128_v34 = vor.u32 %v127_v32, %v126_v30  ;;  %v131_v35 = vshll.u32 %v130_v33, 23 }
  0xbf   :  { %v132_v36 = vor.u32 4788187, %v131_v35  ;;  %v135_v38 = vcvt.s32.f32 %v128_v34 }
  0xc1   :  { %v133_v37 = vand.u32 2147483647, %v132_v36 }
  0xc3   :  { %v136_v39 = vmul.f32 %v135_v38, %v133_v37 }
  0xc5   :  { %v137_v40 = vxor.u32 2147483648, %v136_v39 }
  0xc7   :  { %v138_v42 = vsel %vm55_vm7, %v137_v40, %v136_v39 }
  0xc8   :  { %v141_v43 = vsel %vm54_vm8, %v330_v26, %v138_v42 }
  0xc9   :  { %295 = vcosq.f32 %v141_v43 }
  0xca   :  { %297 = vsinq.f32 %v141_v43 }
  0xd6   :  { %v296_v49 = vpop.eup %295 }
  0xd7   :  { %v298_v50 = vpop.eup %297  ;;  %v152_v51 = vxor.u32 2147483648, %v296_v49 }
  0xd8   :  { %v149_v52 = vxor.u32 2147483648, %v298_v50 }
  0xd9   :  { %v153_v53 = vsel %vm151_vm9, %v152_v51, %v298_v50  ;;  %v258_v31 = vsel %vm256_vm10, %v152_v51, %v298_v50 }
  0xda   :  { %v150_v54 = vsel %vm148_vm11, %v296_v49, %v149_v52  ;;  %v255_v55 = vsel %vm253_vm12, %v296_v49, %v149_v52 }
  0xdb   :  { %v154_v56 = vsel %vm147_vm13, %v150_v54, %v153_v53  ;;  %v259_v57 = vsel %vm252_vm14, %v255_v55, %v258_v31 }
  0xdc   :  { %v155_v58 = vsel %vm145_vm15, nan, %v154_v56  ;;  %v260_v59 = vsel %vm145_vm15, nan, %v259_v57 }
  0xdd   :  { %156 = vst [vmem:[%s359_s2] sm:$0xf] %v155_v58  ;;  %275 = vst [vmem:[%s359_s2 + $0x4] sm:$0xf] %v260_v59 }

</bundles_post_ra>
